<compile_context>
chip_gen: v7x
topology: tpu7x:2x2x1
jax: 0.10.0
libtpu: 0.0.40
codegen_flags: <defaults>
</compile_context>

<pallas_src>
import functools

import jax
import jax.numpy as jnp
from jax import lax
from jax.experimental import pallas as pl
from jax.experimental.pallas import tpu as pltpu

KERNEL_SIZE = 3   # module default (assert kernel_size in (3, 7))
PAD = 1           # padding = 1 for kernel_size == 3
_TAPS = [(di, dj) for di in (-1, 0, 1) for dj in (-1, 0, 1)]


def _spatial_attention_kernel(w_ref, mask_ref, x_ref, o_ref, *,
                              C, HWp, W, RC, n_chunks):
    """One batch block of SpatialAttention, processed in RC-row chunks.

    w_ref    : SMEM f32[18]            conv weight, flattened (in=2, kh=3, kw=3)
    mask_ref : VMEM f32[9, RC, HWp]    0/1 zero-padding mask per conv tap
    x_ref    : VMEM    [bn, C*HWp]     batch block (channels folded on lanes)
    o_ref    : VMEM    [bn, HWp]       output attention map (flat spatial)
    """

    def process_chunk(r0):
        # ---- fused single pass over C: running sum (-> mean) + running max ----
        x0 = x_ref[pl.ds(r0, RC), pl.ds(0, HWp)].astype(jnp.float32)
        if C <= 8:
            s, m = x0, x0
            for c in range(1, C):
                xc = x_ref[pl.ds(r0, RC), pl.ds(c * HWp, HWp)].astype(jnp.float32)
                s = s + xc
                m = jnp.maximum(m, xc)
        else:
            def chan_body(c, carry):
                s, m = carry
                col0 = pl.multiple_of(c * HWp, 128)
                xc = x_ref[pl.ds(r0, RC), pl.ds(col0, HWp)].astype(jnp.float32)
                return s + xc, jnp.maximum(m, xc)
            s, m = lax.fori_loop(1, C, chan_body, (x0, x0), unroll=4)
        avg = s * (1.0 / C)

        # ---- 3x3 conv (2 -> 1, zero padding 1, no bias) via rolls + masks ----
        # Per tap: combine the two input planes first (VPU), roll ONCE (XLU),
        # then zero the out-of-image reads with the precomputed 0/1 mask.
        acc = None
        for tap, (di, dj) in enumerate(_TAPS):
            w_avg = w_ref[0 * 9 + (di + 1) * 3 + (dj + 1)]
            w_max = w_ref[1 * 9 + (di + 1) * 3 + (dj + 1)]
            combo = w_avg * avg + w_max * m
            off = di * W + dj                      # flat-index offset of this tap
            if off == 0:
                term = combo                       # center tap: no roll, no mask
            else:
                term = pltpu.roll(combo, (-off) % HWp, axis=1) * mask_ref[tap]
            acc = term if acc is None else acc + term

        # ---- ReLU + lane-dense store of this chunk ----
        o_ref[pl.ds(r0, RC), :] = jnp.maximum(acc, 0.0).astype(o_ref.dtype)

    if n_chunks == 1:
        process_chunk(0)
    else:
        @pl.loop(0, n_chunks)
        def _(chunk):
            process_chunk(pl.multiple_of(chunk * RC, RC))


def _choose_batch_block(n, per_item_bytes, granule, budget_bytes):
    """Batch rows per grid step: big DMA block, sublane-aligned, >=2 steps."""
    cap = max(1, budget_bytes // max(per_item_bytes, 1))
    cap = min(cap, n)
    # Keep at least 2 grid steps when the batch allows it (v7x has 2 TCs; also
    # lets the pipeline overlap the next x DMA with compute).
    if n >= 2 * granule:
        cap = min(cap, max(granule, n // 2))
    if cap >= granule:
        cap = (cap // granule) * granule
        # Prefer a divisor of n (avoids padded tail work) if one is close by.
        for b in range(cap, max(granule, cap // 2) - 1, -granule):
            if n % b == 0:
                return b
    return max(1, cap)


def spatial_attention(x, conv_weight):
    """x: (N, C, H, W), conv_weight: (1, 2, 3, 3) -> relu(conv(cat(mean, max)))."""
    N, C, H, W = x.shape
    HW = H * W
    HWp = ((HW + 127) // 128) * 128           # lane-pad flat spatial dim
    itemsize = x.dtype.itemsize
    granule = 8 if itemsize >= 4 else 16      # native sublane tile (f32 / bf16)

    # ---- generation-aware VMEM sizing ----
    try:
        vmem_cap = int(pltpu.get_tpu_info().vmem_capacity_bytes)
    except Exception:
        vmem_cap = 64 * 2**20                  # conservative (v7x)
    big_vmem = vmem_cap >= 96 * 2**20          # v5e / v6e (128 MiB)
    budget = (8 << 20) if big_vmem else (3 << 20)

    bn = _choose_batch_block(N, C * HWp * itemsize, granule, budget)
    RC = min(granule, bn)                      # rows live in vregs at a time
    n_chunks = bn // RC                        # bn is a multiple of RC
    grid_n = pl.cdiv(N, bn)
    Npad = grid_n * bn

    # ---- lane-dense (and padded) view of x; row-major reshape is free ----
    if HWp != HW or Npad != N:
        x3 = x.reshape(N, C, HW)
        x3 = jnp.pad(x3, ((0, Npad - N), (0, 0), (0, HWp - HW)))
        x_flat = x3.reshape(Npad, C * HWp)
    else:
        x_flat = x.reshape(N, C * HWp)

    w_flat = conv_weight.reshape(-1).astype(jnp.float32)          # (18,) -> SMEM

    # ---- host-side 0/1 boundary masks for the zero-padded conv taps ----
    f = jnp.arange(HWp, dtype=jnp.int32)
    row, col = f // W, f % W
    in_img = f < HW
    masks = []
    for di, dj in _TAPS:
        ok = (in_img & (row + di >= 0) & (row + di < H)
              & (col + dj >= 0) & (col + dj < W))
        masks.append(ok.astype(jnp.float32))
    masks = jnp.stack(masks)                                       # (9, HWp)
    masks = jnp.broadcast_to(masks[:, None, :], (9, RC, HWp))      # pre-broadcast

    kernel = functools.partial(_spatial_attention_kernel,
                               C=C, HWp=HWp, W=W, RC=RC, n_chunks=n_chunks)

    # VMEM budget: double-buffered x/out blocks + masks + headroom, clamped to
    # this generation's physical VMEM.
    x_block = bn * C * HWp * itemsize
    o_block = bn * HWp * itemsize
    mask_bytes = 9 * RC * HWp * 4
    needed = 2 * (x_block + o_block) + 2 * mask_bytes + (2 << 20)
    vmem_limit = int(min(int(0.75 * vmem_cap), max(32 << 20, needed)))

    out_flat = pl.pallas_call(
        kernel,
        out_shape=jax.ShapeDtypeStruct((Npad, HWp), x.dtype),
        grid_spec=pltpu.PrefetchScalarGridSpec(
            num_scalar_prefetch=0,
            grid=(grid_n,),
            in_specs=[
                pl.BlockSpec(memory_space=pltpu.MemorySpace.SMEM),   # weights
                pl.BlockSpec((9, RC, HWp), lambda n: (0, 0, 0)),     # tap masks
                pl.BlockSpec((bn, C * HWp), lambda n: (n, 0)),       # x block
            ],
            out_specs=pl.BlockSpec((bn, HWp), lambda n: (n, 0)),
        ),
        compiler_params=pltpu.CompilerParams(
            dimension_semantics=("parallel",),      # megacore-shardable axis
            vmem_limit_bytes=vmem_limit),
    )(w_flat, masks, x_flat)

    return out_flat[:N, :HW].reshape(N, 1, H, W)


def reference(x, conv_weight):
    """Pure-JAX reference mirroring the PyTorch forward."""
    avg_out = jnp.mean(x, axis=1, keepdims=True)
    max_out = jnp.max(x, axis=1, keepdims=True)
    cat = jnp.concatenate([avg_out, max_out], axis=1)              # (N, 2, H, W)
    conv = lax.conv_general_dilated(
        cat, conv_weight, window_strides=(1, 1),
        padding=((PAD, PAD), (PAD, PAD)),
        dimension_numbers=("NCHW", "OIHW", "NCHW"))
    return jnp.maximum(conv, 0.0)


if __name__ == "__main__":
    key = jax.random.PRNGKey(0)
    kx, kw = jax.random.split(key)

    N, C, H, W = 2, 4, 16, 16
    x = jax.random.normal(kx, (N, C, H, W), dtype=jnp.float32)

    # Deterministic conv weight, shape (out=1, in=2, 3, 3) like nn.Conv2d(2, 1, 3).
    conv_weight = 0.3 * jax.random.normal(kw, (1, 2, 3, 3), dtype=jnp.float32)

    out = spatial_attention(x, conv_weight)
    out = jax.block_until_ready(out)

    ref = reference(x, conv_weight)
    assert out.shape == (N, 1, H, W)
    assert jnp.allclose(out, ref, atol=1e-5, rtol=1e-5), "mismatch vs reference"

    print("KERNEL_OK")
</pallas_src>

<mosaic_0001>
module attributes {stable_mosaic.version = 11 : i64} {
  func.func @_spatial_attention_kernel(%arg0: i32, %arg1: memref<18xf32, #tpu.memory_space<smem>>, %arg2: memref<9x2x256xf32, #tpu.memory_space<vmem>>, %arg3: memref<2x1024xf32, #tpu.memory_space<vmem>>, %arg4: memref<2x256xf32, #tpu.memory_space<vmem>>) attributes {dimension_semantics = [#tpu.dimension_semantics<parallel>], iteration_bounds = array<i64: 1>, scalar_prefetch = 0 : i64, scratch_operands = 0 : i64, tpu.core_type = #tpu.core_type<tc>, window_params = [{transform_indices = @transform_0, window_bounds = array<i64: 18>}, {pipeline_mode = #tpu.pipeline_mode<synchronous>, transform_indices = @transform_1, window_bounds = array<i64: 9, 2, 256>}, {transform_indices = @transform_2, window_bounds = array<i64: 2, 1024>}, {transform_indices = @transform_3, window_bounds = array<i64: 2, 256>}]} {
    %c0 = arith.constant 0 : index
    %c0_0 = arith.constant 0 : index
    %0 = vector.load %arg3[%c0, %c0_0] : memref<2x1024xf32, #tpu.memory_space<vmem>>, vector<2x256xf32>
    %c0_1 = arith.constant 0 : index
    %c256 = arith.constant 256 : index
    %1 = vector.load %arg3[%c0_1, %c256] : memref<2x1024xf32, #tpu.memory_space<vmem>>, vector<2x256xf32>
    %2 = arith.addf %0, %1 : vector<2x256xf32>
    %3 = arith.maximumf %0, %1 : vector<2x256xf32>
    %c0_2 = arith.constant 0 : index
    %c512 = arith.constant 512 : index
    %4 = vector.load %arg3[%c0_2, %c512] : memref<2x1024xf32, #tpu.memory_space<vmem>>, vector<2x256xf32>
    %5 = arith.addf %2, %4 : vector<2x256xf32>
    %6 = arith.maximumf %3, %4 : vector<2x256xf32>
    %c0_3 = arith.constant 0 : index
    %c768 = arith.constant 768 : index
    %7 = vector.load %arg3[%c0_3, %c768] : memref<2x1024xf32, #tpu.memory_space<vmem>>, vector<2x256xf32>
    %8 = arith.addf %5, %7 : vector<2x256xf32>
    %9 = arith.maximumf %6, %7 : vector<2x256xf32>
    %cst = arith.constant 2.500000e-01 : f32
    %10 = vector.broadcast %cst : f32 to vector<2x256xf32>
    %11 = arith.mulf %8, %10 : vector<2x256xf32>
    %c0_4 = arith.constant 0 : index
    %12 = memref.load %arg1[%c0_4] : memref<18xf32, #tpu.memory_space<smem>>
    %c9 = arith.constant 9 : index
    %13 = memref.load %arg1[%c9] : memref<18xf32, #tpu.memory_space<smem>>
    %14 = vector.broadcast %12 : f32 to vector<2x256xf32>
    %15 = arith.mulf %14, %11 : vector<2x256xf32>
    %16 = vector.broadcast %13 : f32 to vector<2x256xf32>
    %17 = arith.mulf %16, %9 : vector<2x256xf32>
    %18 = arith.addf %15, %17 : vector<2x256xf32>
    %c17_i32 = arith.constant 17 : i32
    %19 = tpu.dynamic_rotate %18 by %c17_i32 dim 1 : vector<2x256xf32>, i32 -> vector<2x256xf32>
    %c0_5 = arith.constant 0 : index
    %c0_6 = arith.constant 0 : index
    %c0_7 = arith.constant 0 : index
    %20 = vector.load %arg2[%c0_5, %c0_6, %c0_7] : memref<9x2x256xf32, #tpu.memory_space<vmem>>, vector<1x2x256xf32>
    %21 = vector.shape_cast %20 : vector<1x2x256xf32> to vector<2x256xf32>
    %22 = arith.mulf %19, %21 : vector<2x256xf32>
    %c1 = arith.constant 1 : index
    %23 = memref.load %arg1[%c1] : memref<18xf32, #tpu.memory_space<smem>>
    %c10 = arith.constant 10 : index
    %24 = memref.load %arg1[%c10] : memref<18xf32, #tpu.memory_space<smem>>
    %25 = vector.broadcast %23 : f32 to vector<2x256xf32>
    %26 = arith.mulf %25, %11 : vector<2x256xf32>
    %27 = vector.broadcast %24 : f32 to vector<2x256xf32>
    %28 = arith.mulf %27, %9 : vector<2x256xf32>
    %29 = arith.addf %26, %28 : vector<2x256xf32>
    %c16_i32 = arith.constant 16 : i32
    %30 = tpu.dynamic_rotate %29 by %c16_i32 dim 1 : vector<2x256xf32>, i32 -> vector<2x256xf32>
    %c1_8 = arith.constant 1 : index
    %c0_9 = arith.constant 0 : index
    %c0_10 = arith.constant 0 : index
    %31 = vector.load %arg2[%c1_8, %c0_9, %c0_10] : memref<9x2x256xf32, #tpu.memory_space<vmem>>, vector<1x2x256xf32>
    %32 = vector.shape_cast %31 : vector<1x2x256xf32> to vector<2x256xf32>
    %33 = arith.mulf %30, %32 : vector<2x256xf32>
    %34 = arith.addf %22, %33 : vector<2x256xf32>
    %c2 = arith.constant 2 : index
    %35 = memref.load %arg1[%c2] : memref<18xf32, #tpu.memory_space<smem>>
    %c11 = arith.constant 11 : index
    %36 = memref.load %arg1[%c11] : memref<18xf32, #tpu.memory_space<smem>>
    %37 = vector.broadcast %35 : f32 to vector<2x256xf32>
    %38 = arith.mulf %37, %11 : vector<2x256xf32>
    %39 = vector.broadcast %36 : f32 to vector<2x256xf32>
    %40 = arith.mulf %39, %9 : vector<2x256xf32>
    %41 = arith.addf %38, %40 : vector<2x256xf32>
    %c15_i32 = arith.constant 15 : i32
    %42 = tpu.dynamic_rotate %41 by %c15_i32 dim 1 : vector<2x256xf32>, i32 -> vector<2x256xf32>
    %c2_11 = arith.constant 2 : index
    %c0_12 = arith.constant 0 : index
    %c0_13 = arith.constant 0 : index
    %43 = vector.load %arg2[%c2_11, %c0_12, %c0_13] : memref<9x2x256xf32, #tpu.memory_space<vmem>>, vector<1x2x256xf32>
    %44 = vector.shape_cast %43 : vector<1x2x256xf32> to vector<2x256xf32>
    %45 = arith.mulf %42, %44 : vector<2x256xf32>
    %46 = arith.addf %34, %45 : vector<2x256xf32>
    %c3 = arith.constant 3 : index
    %47 = memref.load %arg1[%c3] : memref<18xf32, #tpu.memory_space<smem>>
    %c12 = arith.constant 12 : index
    %48 = memref.load %arg1[%c12] : memref<18xf32, #tpu.memory_space<smem>>
    %49 = vector.broadcast %47 : f32 to vector<2x256xf32>
    %50 = arith.mulf %49, %11 : vector<2x256xf32>
    %51 = vector.broadcast %48 : f32 to vector<2x256xf32>
    %52 = arith.mulf %51, %9 : vector<2x256xf32>
    %53 = arith.addf %50, %52 : vector<2x256xf32>
    %c1_i32 = arith.constant 1 : i32
    %54 = tpu.dynamic_rotate %53 by %c1_i32 dim 1 : vector<2x256xf32>, i32 -> vector<2x256xf32>
    %c3_14 = arith.constant 3 : index
    %c0_15 = arith.constant 0 : index
    %c0_16 = arith.constant 0 : index
    %55 = vector.load %arg2[%c3_14, %c0_15, %c0_16] : memref<9x2x256xf32, #tpu.memory_space<vmem>>, vector<1x2x256xf32>
    %56 = vector.shape_cast %55 : vector<1x2x256xf32> to vector<2x256xf32>
    %57 = arith.mulf %54, %56 : vector<2x256xf32>
    %58 = arith.addf %46, %57 : vector<2x256xf32>
    %c4 = arith.constant 4 : index
    %59 = memref.load %arg1[%c4] : memref<18xf32, #tpu.memory_space<smem>>
    %c13 = arith.constant 13 : index
    %60 = memref.load %arg1[%c13] : memref<18xf32, #tpu.memory_space<smem>>
    %61 = vector.broadcast %59 : f32 to vector<2x256xf32>
    %62 = arith.mulf %61, %11 : vector<2x256xf32>
    %63 = vector.broadcast %60 : f32 to vector<2x256xf32>
    %64 = arith.mulf %63, %9 : vector<2x256xf32>
    %65 = arith.addf %62, %64 : vector<2x256xf32>
    %66 = arith.addf %58, %65 : vector<2x256xf32>
    %c5 = arith.constant 5 : index
    %67 = memref.load %arg1[%c5] : memref<18xf32, #tpu.memory_space<smem>>
    %c14 = arith.constant 14 : index
    %68 = memref.load %arg1[%c14] : memref<18xf32, #tpu.memory_space<smem>>
    %69 = vector.broadcast %67 : f32 to vector<2x256xf32>
    %70 = arith.mulf %69, %11 : vector<2x256xf32>
    %71 = vector.broadcast %68 : f32 to vector<2x256xf32>
    %72 = arith.mulf %71, %9 : vector<2x256xf32>
    %73 = arith.addf %70, %72 : vector<2x256xf32>
    %c255_i32 = arith.constant 255 : i32
    %74 = tpu.dynamic_rotate %73 by %c255_i32 dim 1 : vector<2x256xf32>, i32 -> vector<2x256xf32>
    %c5_17 = arith.constant 5 : index
    %c0_18 = arith.constant 0 : index
    %c0_19 = arith.constant 0 : index
    %75 = vector.load %arg2[%c5_17, %c0_18, %c0_19] : memref<9x2x256xf32, #tpu.memory_space<vmem>>, vector<1x2x256xf32>
    %76 = vector.shape_cast %75 : vector<1x2x256xf32> to vector<2x256xf32>
    %77 = arith.mulf %74, %76 : vector<2x256xf32>
    %78 = arith.addf %66, %77 : vector<2x256xf32>
    %c6 = arith.constant 6 : index
    %79 = memref.load %arg1[%c6] : memref<18xf32, #tpu.memory_space<smem>>
    %c15 = arith.constant 15 : index
    %80 = memref.load %arg1[%c15] : memref<18xf32, #tpu.memory_space<smem>>
    %81 = vector.broadcast %79 : f32 to vector<2x256xf32>
    %82 = arith.mulf %81, %11 : vector<2x256xf32>
    %83 = vector.broadcast %80 : f32 to vector<2x256xf32>
    %84 = arith.mulf %83, %9 : vector<2x256xf32>
    %85 = arith.addf %82, %84 : vector<2x256xf32>
    %c241_i32 = arith.constant 241 : i32
    %86 = tpu.dynamic_rotate %85 by %c241_i32 dim 1 : vector<2x256xf32>, i32 -> vector<2x256xf32>
    %c6_20 = arith.constant 6 : index
    %c0_21 = arith.constant 0 : index
    %c0_22 = arith.constant 0 : index
    %87 = vector.load %arg2[%c6_20, %c0_21, %c0_22] : memref<9x2x256xf32, #tpu.memory_space<vmem>>, vector<1x2x256xf32>
    %88 = vector.shape_cast %87 : vector<1x2x256xf32> to vector<2x256xf32>
    %89 = arith.mulf %86, %88 : vector<2x256xf32>
    %90 = arith.addf %78, %89 : vector<2x256xf32>
    %c7 = arith.constant 7 : index
    %91 = memref.load %arg1[%c7] : memref<18xf32, #tpu.memory_space<smem>>
    %c16 = arith.constant 16 : index
    %92 = memref.load %arg1[%c16] : memref<18xf32, #tpu.memory_space<smem>>
    %93 = vector.broadcast %91 : f32 to vector<2x256xf32>
    %94 = arith.mulf %93, %11 : vector<2x256xf32>
    %95 = vector.broadcast %92 : f32 to vector<2x256xf32>
    %96 = arith.mulf %95, %9 : vector<2x256xf32>
    %97 = arith.addf %94, %96 : vector<2x256xf32>
    %c240_i32 = arith.constant 240 : i32
    %98 = tpu.dynamic_rotate %97 by %c240_i32 dim 1 : vector<2x256xf32>, i32 -> vector<2x256xf32>
    %c7_23 = arith.constant 7 : index
    %c0_24 = arith.constant 0 : index
    %c0_25 = arith.constant 0 : index
    %99 = vector.load %arg2[%c7_23, %c0_24, %c0_25] : memref<9x2x256xf32, #tpu.memory_space<vmem>>, vector<1x2x256xf32>
    %100 = vector.shape_cast %99 : vector<1x2x256xf32> to vector<2x256xf32>
    %101 = arith.mulf %98, %100 : vector<2x256xf32>
    %102 = arith.addf %90, %101 : vector<2x256xf32>
    %c8 = arith.constant 8 : index
    %103 = memref.load %arg1[%c8] : memref<18xf32, #tpu.memory_space<smem>>
    %c17 = arith.constant 17 : index
    %104 = memref.load %arg1[%c17] : memref<18xf32, #tpu.memory_space<smem>>
    %105 = vector.broadcast %103 : f32 to vector<2x256xf32>
    %106 = arith.mulf %105, %11 : vector<2x256xf32>
    %107 = vector.broadcast %104 : f32 to vector<2x256xf32>
    %108 = arith.mulf %107, %9 : vector<2x256xf32>
    %109 = arith.addf %106, %108 : vector<2x256xf32>
    %c239_i32 = arith.constant 239 : i32
    %110 = tpu.dynamic_rotate %109 by %c239_i32 dim 1 : vector<2x256xf32>, i32 -> vector<2x256xf32>
    %c8_26 = arith.constant 8 : index
    %c0_27 = arith.constant 0 : index
    %c0_28 = arith.constant 0 : index
    %111 = vector.load %arg2[%c8_26, %c0_27, %c0_28] : memref<9x2x256xf32, #tpu.memory_space<vmem>>, vector<1x2x256xf32>
    %112 = vector.shape_cast %111 : vector<1x2x256xf32> to vector<2x256xf32>
    %113 = arith.mulf %110, %112 : vector<2x256xf32>
    %114 = arith.addf %102, %113 : vector<2x256xf32>
    %cst_29 = arith.constant 0.000000e+00 : f32
    %115 = vector.broadcast %cst_29 : f32 to vector<2x256xf32>
    %116 = arith.maximumf %114, %115 : vector<2x256xf32>
    %c0_30 = arith.constant 0 : index
    %c0_31 = arith.constant 0 : index
    %117 = vector.load %arg4[%c0_30, %c0_31] : memref<2x256xf32, #tpu.memory_space<vmem>>, vector<2x256xf32>
    tpu.vector_store %arg4[%c0_30, %c0_31], %116 {strides = array<i32>} : memref<2x256xf32, #tpu.memory_space<vmem>>, vector<2x256xf32>,
    return
  }
  func.func @transform_0(%arg0: i32) -> i32 {
    %c0_i32 = arith.constant 0 : i32
    %c0_i32_0 = arith.constant 0 : i32
    return %c0_i32 : i32
  }
  func.func @transform_1(%arg0: i32) -> (i32, i32, i32) {
    %c0_i32 = arith.constant 0 : i32
    %c0_i32_0 = arith.constant 0 : i32
    %c0_i32_1 = arith.constant 0 : i32
    %c0_i32_2 = arith.constant 0 : i32
    return %c0_i32, %c0_i32_0, %c0_i32_1 : i32, i32, i32
  }
  func.func @transform_2(%arg0: i32) -> (i32, i32) {
    %c0_i32 = arith.constant 0 : i32
    %c0_i32_0 = arith.constant 0 : i32
    return %arg0, %c0_i32 : i32, i32
  }
  func.func @transform_3(%arg0: i32) -> (i32, i32) {
    %c0_i32 = arith.constant 0 : i32
    %c0_i32_0 = arith.constant 0 : i32
    return %arg0, %c0_i32 : i32, i32
  }
}

</mosaic_0001>

<bundles_post_ra>
// kernel: tpu_custom_call.1
= control target key start
LH: loop header
LB: loop body
LE: loop exit
PB: predicated region body
PF: predicated region fallthrough
CT: control target
= control target key end

     0   :  { %8 = vsyncpa [#allocation5], 0  ;;  %s737_s0 = inlined_call_operand.hbm [shape: f32[18], index: 0, kind: input, shape index: {}]   ;;  %s738_s1 = inlined_call_operand.hbm [shape: f32[9,2,256], index: 1, kind: input, shape index: {}]   ;;  %s739_s2 = inlined_call_operand.hbm [shape: f32[2,1024], index: 2, kind: input, shape index: {}]   ;;  %s740_s3 = inlined_call_operand.hbm [shape: f32[2,256], index: 3, kind: output, shape index: {}]  }
   0x1   :  { %9 = vsyncpa [#allocation3], 0 }
   0x2   :  { %10 = vsyncpa [#allocation8], 0 }
   0x3   :  { %11 = vsyncpa [#allocation4], 0  ;;  %s490_s14 = scalar_lea.hbm %s737_s0, 16 }
   0x4   :  { %p491_p0 = scmp.ne.s32.totalorder %s737_s0, %s490_s14  ;;  %p494_p1 = scmp.lt.u32.totalorder %s490_s14, %s737_s0 }
   0x6   :  { %p496_p2 = pnand %p494_p1, %p491_p0 }
   0x8   :  { %499 = shalt.err (!%p496_p2)
}
   0x9   :  { %s574_s19 = smov [#allocation2]   ;;  %s575_s22 = smov [#allocation6]  }
   0xa   :  { %19 = dma.hbm_to_smem %s737_s0, 16, %s574_s19, [#allocation5]  }
   0xb   :  { %s25_s23 = sshll.u32 %s575_s22, 4  ;;  %s500_s26 = scalar_lea.hbm %s738_s1, 576  ;;  %s26_s23 = int_to_ptr.vmem [resolvable:$true] %s25_s23 }
   0xc   :  { %p501_p3 = scmp.ne.s32.totalorder %s738_s1, %s500_s26  ;;  %p504_p4 = scmp.lt.u32.totalorder %s500_s26, %s738_s1 }
   0xe   :  { %p506_p5 = pnand %p504_p4, %p501_p3 }
  0x10   :  { %509 = shalt.err (!%p506_p5)
}
  0x11   :  { %s510_s4 = scalar_lea.vmem %s26_s23, 576  ;;  %p515_p7 = scmp.lt.s32.totalorder %s26_s23, %s26_s23 }
  0x12   :  { %p511_p6 = scmp.ne.s32.totalorder %s26_s23, %s510_s4  ;;  %p516_p8 = scmp.lt.s32.totalorder %s510_s4, %s510_s4 }
  0x14   :  { %p517_p9 = por %p516_p8, %p515_p7 }
  0x16   :  { %p518_p10 = pnand %p517_p9, %p511_p6 }
  0x18   :  { %521 = shalt.err (!%p518_p10)
}
  0x19   :  { %s576_s0 = smov 64   ;;  %s577_s5 = smov 4  }
  0x1a   :  { %31 = dma.hbm_to_vmem [thread:$0]  %s738_s1, 576, %s26_s23, [#allocation3], %s576_s0, %s576_s0, %s577_s5  }
  0x1b   :  { %s578_s8 = smov [#allocation7]   ;;  %s522_s12 = scalar_lea.hbm %s739_s2, 256 }
  0x1c   :  { %s38_s9 = sshll.u32 %s578_s8, 4  ;;  %p523_p11 = scmp.ne.s32.totalorder %s739_s2, %s522_s12  ;;  %s39_s9 = int_to_ptr.vmem [resolvable:$true] %s38_s9 }
  0x1d   :  { %p526_p12 = scmp.lt.u32.totalorder %s522_s12, %s739_s2 }
  0x1f   :  { %p528_p13 = pnand %p526_p12, %p523_p11 }
  0x21   :  { %531 = shalt.err (!%p528_p13)
}
  0x22   :  { %s532_s17 = scalar_lea.vmem %s39_s9, 256  ;;  %p537_p1 = scmp.lt.s32.totalorder %s39_s9, %s39_s9 }
  0x23   :  { %p533_p0 = scmp.ne.s32.totalorder %s39_s9, %s532_s17  ;;  %p538_p2 = scmp.lt.s32.totalorder %s532_s17, %s532_s17 }
  0x25   :  { %p539_p3 = por %p538_p2, %p537_p1 }
  0x27   :  { %p540_p4 = pnand %p539_p3, %p533_p0 }
  0x29   :  { %543 = shalt.err (!%p540_p4)
}
  0x2a   :  { %41 = dma.hbm_to_vmem [thread:$0]  %s739_s2, 256, %s39_s9, [#allocation8]  }
  0x2b   :  { %566 = dma.done.wait [#allocation5], 16  }
  0x2c   :  { %567 = vsyncadd [#allocation5], 4294967280 }
  0x2d   :  { %568 = dma.done.wait [#allocation3], 576  }
  0x2e   :  { %569 = vsyncadd [#allocation3], 4294966720 }
  0x2f   :  { %570 = dma.done.wait [#allocation8], 256  }
  0x30   :  { %571 = vsyncadd [#allocation8], 4294967040 }
  0x31   :  { %51 = sfence }
  0x32   :  { %v52_v0 = vld [vmem:[#allocation7] sm:$0xf]  ;;  %v53_v1 = vld [vmem:[#allocation7 + $0x4] sm:$0xf]  ;;  %v56_v2 = vld [vmem:[#allocation7 + $0x8] sm:$0xf]  ;;  %v74_v3 = vlaneseq }
  0x33   :  { %v54_v4 = vadd.f32 %v53_v1, %v52_v0  ;;  %v55_v5 = vmax.f32 %v52_v0, %v53_v1  ;;  %s451_s19 = sld [smem:[#allocation2 + $0x1]]  ;;  %v59_v6 = vld [vmem:[#allocation7 + $0xc] sm:$0xf]  ;;  %v579_v7 = vmov 1983009808   ;;  %s452_s20 = sld [smem:[#allocation2 + $0xa]] }
  0x34   :  { %v72_v8 = vunpack.c.l.s4 %v579_v7  ;;  %s63_s2 = sld [smem:[#allocation2]]  ;;  %s449_s21 = sld [smem:[#allocation2 + $0x9]]  ;;  %v75_v12 = vshrl.u32 %v74_v3, 7 }
  0x35   :  { %v57_v9 = vadd.f32 %v56_v2, %v54_v4  ;;  %v58_v10 = vmax.f32 %v55_v5, %v56_v2  ;;  %s454_s22 = sld [smem:[#allocation2 + $0x2]]  ;;  %s455_s23 = sld [smem:[#allocation2 + $0xb]] }
  0x36   :  { %v73_v11 = vunpack.c.0.s8 %v72_v8  ;;  %s457_s24 = sld [smem:[#allocation2 + $0x3]]  ;;  %s458_s25 = sld [smem:[#allocation2 + $0xc]] }
  0x37   :  { %v60_v13 = vadd.f32 %v59_v6, %v57_v9  ;;  %v646_v14 = vmax.f32 %v58_v10, %v59_v6  ;;  %s462_s26 = sld [smem:[#allocation2 + $0x5]]  ;;  %s652_s27 = sld [smem:[#allocation2 + $0xe]] }
  0x38   :  { %v650_v17 = vsub.s32 %v73_v11, %v75_v12  ;;  %s656_s28 = sld [smem:[#allocation2 + $0x6]]  ;;  %s658_s29 = sld [smem:[#allocation2 + $0xf]] }
  0x39   :  { %v648_v15 = vmul.f32 0.25, %v60_v13  ;;  %v106_v16 = vstv %s451_s19  ;;  %v108_v18 = vstv %s452_s20  ;;  %s663_s30 = sld [smem:[#allocation2 + $0x7]]  ;;  %s666_s4 = sld [smem:[#allocation2 + $0x10]] }
  0x3a   :  { %v109_v20 = vmul.f32 %v108_v18, %v646_v14  ;;  %v65_v21 = vstv %s63_s2  ;;  %v67_v22 = vstv %s449_s21  ;;  %s674_s0 = sld [smem:[#allocation2 + $0x8]]  ;;  %s676_s5 = sld [smem:[#allocation2 + $0x4]] }
  0x3b   :  { %v107_v19 = vmul.f32 %v106_v16, %v648_v15  ;;  %v66_v23 = vmul.f32 %v65_v21, %v648_v15  ;;  %v68_v24 = vmul.f32 %v67_v22, %v646_v14  ;;  %v148_v25 = vstv %s454_s22  ;;  %s580_s6 = smov 16   ;;  %s581_s7 = smov 17   ;;  %v453_v22 = vld.sshfl [vmem:[#allocation6 + $0x4] sm:$0x33 pattern:$0x76325410] }
  0x3c   :  { %v149_v27 = vmul.f32 %v148_v25, %v648_v15  ;;  %v150_v28 = vstv %s455_s23  ;;  %v190_v31 = vstv %s457_s24  ;;  %v192_v32 = vstv %s458_s25  ;;  %s683_s8 = sld [smem:[#allocation2 + $0x11]]  ;;  %s461_s9 = sld [smem:[#allocation2 + $0xd]] }
  0x3d   :  { %v110_v26 = vadd.f32 %v109_v20, %v107_v19  ;;  %v69_v29 = vadd.f32 %v68_v24, %v66_v23  ;;  %v151_v30 = vmul.f32 %v150_v28, %v646_v14  ;;  %v191_v34 = vmul.f32 %v190_v31, %v648_v15  ;;  %s582_s10 = smov 15   ;;  %s583_s11 = smov 1   ;;  %v450_v24 = vld.sshfl [vmem:[#allocation6] sm:$0x33 pattern:$0x76325410] }
  0x3e   :  { %v193_v35 = vmul.f32 %v192_v32, %v646_v14  ;;  %v252_v36 = vstv %s462_s26  ;;  %v254_v40 = vstv %s652_s27  ;;  %v294_v45 = vstv %s656_s28  ;;  %s584_s12 = smov 127   ;;  %s585_s13 = smov 113  }
  0x3f   :  { %v118_v33 = vrot.slane %v110_v26, %v650_v17  ;;  %v77_v37 = vrot.slane %v69_v29, %v650_v17  ;;  %v152_v38 = vadd.f32 %v151_v30, %v149_v27  ;;  %v253_v39 = vmul.f32 %v252_v36, %v648_v15  ;;  %s586_s14 = smov 112   ;;  %s587_s15 = smov 111   ;;  %v459_v26 = vld.sshfl [vmem:[#allocation6 + $0xc] sm:$0x33 pattern:$0x76325410] }
  0x40   :  { %v255_v42 = vmul.f32 %v254_v40, %v646_v14  ;;  %v194_v44 = vadd.f32 %v193_v35, %v191_v34  ;;  %v296_v46 = vstv %s658_s29  ;;  %v295_v49 = vmul.f32 %v294_v45, %v648_v15  ;;  %s588_s16 = smov [#allocation9]  }
  0x41   :  { %122 = vrot.lane.b32.xlu1 %v118_v33, %s580_s6  ;;  %v119_v41 = vcombine.high %v118_v33, %v118_v33  ;;  %81 = vrot.lane.b32.xlu0 %v77_v37, %s581_s7  ;;  %v160_v43 = vrot.slane %v152_v38, %v650_v17  ;;  %v297_v50 = vmul.f32 %v296_v46, %v646_v14  ;;  %v336_v51 = vstv %s663_s30  ;;  %s438_s17 = sshll.u32 %s588_s16, 4  ;;  %s439_s17 = int_to_ptr.vmem [resolvable:$true] %s438_s17 }
  0x42   :  { %v256_v47 = vadd.f32 %v255_v42, %v253_v39  ;;  %v202_v52 = vrot.slane %v194_v44, %v650_v17  ;;  %v338_v53 = vstv %s666_s4  ;;  %v337_v55 = vmul.f32 %v336_v51, %v648_v15  ;;  %v464_v42 = vld.sshfl [vmem:[#allocation6 + $0x14] sm:$0x33 pattern:$0x76325410]  ;;  %s544_s1 = scalar_lea.vmem %s439_s17, 64  ;;  %p549_p6 = scmp.lt.s32.totalorder %s439_s17, %s439_s17 }
  0x43   :  { %v161_v48 = vcombine.high %v160_v43, %v160_v43  ;;  %v378_v56 = vstv %s674_s0  ;;  %v232_v57 = vstv %s676_s5  ;;  %v298_v59 = vadd.f32 %v297_v50, %v295_v49  ;;  %p545_p5 = scmp.ne.s32.totalorder %s439_s17, %s544_s1  ;;  %p550_p7 = scmp.lt.s32.totalorder %s544_s1, %s544_s1 }
  0x44   :  { %v264_v54 = vrot.slane %v256_v47, %v650_v17  ;;  %v203_v58 = vcombine.high %v202_v52, %v202_v52  ;;  %v339_v60 = vmul.f32 %v338_v53, %v646_v14  ;;  %v233_v61 = vmul.f32 %v232_v57, %v648_v15  ;;  %v467_v53 = vld.sshfl [vmem:[#allocation6 + $0x18] sm:$0x33 pattern:$0x76325410] }
  0x45   :  { %124 = vrot.lane.b32.xlu1 %v119_v41, %s580_s6  ;;  %164 = vrot.lane.b32.xlu0 %v160_v43, %s582_s10  ;;  %v78_v62 = vcombine.high %v77_v37, %v77_v37  ;;  %v380_v63 = vstv %s683_s8  ;;  %v234_v0 = vstv %s461_s9  ;;  %v379_v4 = vmul.f32 %v378_v56, %v648_v15  ;;  %p551_p8 = por %p550_p7, %p549_p6 }
  0x46   :  { %v235_v1 = vmul.f32 %v234_v0, %v646_v14  ;;  %v265_v2 = vcombine.high %v264_v54, %v264_v54  ;;  %v306_v5 = vrot.slane %v298_v59, %v650_v17  ;;  %v340_v6 = vadd.f32 %v339_v60, %v337_v55 }
  0x47   :  { %v381_v7 = vmul.f32 %v380_v63, %v646_v14  ;;  %v708_v20 = vand.u32 127, %v74_v3  ;;  %v139_v27 = vcombine.high %v453_v22, %v453_v22  ;;  %v99_v28 = vcombine.high %v450_v24, %v450_v24  ;;  %p552_p9 = pnand %p551_p8, %p545_p5 }
  0x48   :  { %v236_v8 = vadd.f32 %v235_v1, %v233_v61  ;;  %v307_v10 = vcombine.high %v306_v5, %v306_v5  ;;  %v348_v11 = vrot.slane %v340_v6, %v650_v17  ;;  %v223_v32 = vcombine.high %v459_v26, %v459_v26 }
  0x49   :  { %166 = vrot.lane.b32.xlu1 %v161_v48, %s582_s10  ;;  %206 = vrot.lane.b32.xlu0 %v202_v52, %s583_s11  ;;  %v382_v12 = vadd.f32 %v381_v7, %v379_v4  ;;  %vm126_vm0 = vcmp.lt.s32.totalorder %v708_v20, 16  ;;  %vm168_vm1 = vcmp.lt.s32.totalorder %v708_v20, 15  ;;  %vm87_vm2 = vcmp.lt.s32.totalorder %v708_v20, 17 }
  0x4a   :  { %v703_v9 = vrot.slane %v236_v8, %v650_v17  ;;  %v349_v13 = vcombine.high %v348_v11, %v348_v11  ;;  %vm210_vm3 = vcmp.lt.s32.totalorder %v708_v20, 1  ;;  %vm272_vm4 = vcmp.lt.s32.totalorder %v708_v20, 127 }
  0x4b   :  { %v390_v15 = vrot.slane %v382_v12, %v650_v17  ;;  %v456_v17 = vld.sshfl [vmem:[#allocation6 + $0x8] sm:$0x33 pattern:$0x76325410]  ;;  %v285_v52 = vcombine.high %v464_v42, %v464_v42  ;;  %vm314_vm5 = vcmp.lt.s32.totalorder %v708_v20, 113  ;;  %v327_v0 = vcombine.high %v467_v53, %v467_v53 }
  0x4c   :  { %v181_v3 = vcombine.high %v456_v17, %v456_v17  ;;  %v245_v51 = vcombine.high %v703_v9, %v703_v9  ;;  %vm356_vm6 = vcmp.lt.s32.totalorder %v708_v20, 112  ;;  %vm398_vm7 = vcmp.lt.s32.totalorder %v708_v20, 111 }
  0x4d   :  { %208 = vrot.lane.b32.xlu1 %v203_v58, %s583_s11  ;;  %83 = vrot.lane.b32.xlu0 %v78_v62, %s581_s7  ;;  %v391_v14 = vcombine.high %v390_v15, %v390_v15  ;;  %v470_v58 = vld.sshfl [vmem:[#allocation6 + $0x1c] sm:$0x33 pattern:$0x76325410] }
  0x51   :  { %270 = vrot.lane.b32.xlu1 %v265_v2, %s584_s12  ;;  %268 = vrot.lane.b32.xlu0 %v264_v54, %s584_s12 }
  0x55   :  { %312 = vrot.lane.b32.xlu1 %v307_v10, %s585_s13  ;;  %310 = vrot.lane.b32.xlu0 %v306_v5, %s585_s13  ;;  %v369_v5 = vcombine.high %v470_v58, %v470_v58 }
  0x59   :  { %354 = vrot.lane.b32.xlu1 %v349_v13, %s586_s14  ;;  %352 = vrot.lane.b32.xlu0 %v348_v11, %s586_s14  ;;  %v473_v11 = vld.sshfl [vmem:[#allocation6 + $0x20] sm:$0x33 pattern:$0x76325410] }
  0x5d   :  { %396 = vrot.lane.b32.xlu1 %v391_v14, %s587_s15  ;;  %394 = vrot.lane.b32.xlu0 %v390_v15, %s587_s15 }
  0xb3   :  { %v123_v16 = vpop.permute.xlu1 %122  ;;  %v82_v18 = vpop.permute.xlu0 %81 }
  0xb7   :  { %v125_v19 = vpop.permute.xlu1 %124  ;;  %v165_v21 = vpop.permute.xlu0 %164 }
  0xb8   :  { %v127_v29 = vsel %vm126_vm0, %v123_v16, %v125_v19  ;;  %v128_v30 = vsel %vm126_vm0, %v125_v19, %v123_v16 }
  0xb9   :  { %v142_v38 = vmul.f32 %v453_v22, %v128_v30  ;;  %v143_v39 = vmul.f32 %v139_v27, %v127_v29  ;;  %v411_v22 = vcombine.high %v473_v11, %v473_v11 }
  0xbb   :  { %v167_v23 = vpop.permute.xlu1 %166  ;;  %v207_v25 = vpop.permute.xlu0 %206 }
  0xbc   :  { %v169_v34 = vsel %vm168_vm1, %v165_v21, %v167_v23  ;;  %v170_v35 = vsel %vm168_vm1, %v167_v23, %v165_v21 }
  0xbd   :  { %v184_v46 = vmul.f32 %v456_v17, %v170_v35  ;;  %v185_v47 = vmul.f32 %v181_v3, %v169_v34 }
  0xbf   :  { %v209_v31 = vpop.permute.xlu1 %208  ;;  %v84_v33 = vpop.permute.xlu0 %83 }
  0xc0   :  { %v88_v36 = vsel %vm87_vm2, %v82_v18, %v84_v33  ;;  %v89_v37 = vsel %vm87_vm2, %v84_v33, %v82_v18  ;;  %v211_v43 = vsel %vm210_vm3, %v207_v25, %v209_v31  ;;  %v212_v44 = vsel %vm210_vm3, %v209_v31, %v207_v25 }
  0xc1   :  { %v102_v40 = vmul.f32 %v450_v24, %v89_v37  ;;  %v103_v41 = vmul.f32 %v99_v28, %v88_v36  ;;  %v226_v54 = vmul.f32 %v459_v26, %v212_v44  ;;  %v227_v55 = vmul.f32 %v223_v32, %v211_v43 }
  0xc3   :  { %v271_v45 = vpop.permute.xlu1 %270  ;;  %v144_v48 = vadd.f32 %v142_v38, %v102_v40  ;;  %v145_v49 = vadd.f32 %v143_v39, %v103_v41  ;;  %v269_v50 = vpop.permute.xlu0 %268 }
  0xc4   :  { %v273_v59 = vsel %vm272_vm4, %v269_v50, %v271_v45  ;;  %v274_v60 = vsel %vm272_vm4, %v271_v45, %v269_v50 }
  0xc5   :  { %v186_v56 = vadd.f32 %v184_v46, %v144_v48  ;;  %v187_v57 = vadd.f32 %v185_v47, %v145_v49  ;;  %v288_v8 = vmul.f32 %v464_v42, %v273_v59  ;;  %v289_v10 = vmul.f32 %v285_v52, %v274_v60 }
  0xc7   :  { %v313_v61 = vpop.permute.xlu1 %312  ;;  %v228_v62 = vadd.f32 %v226_v54, %v186_v56  ;;  %v229_v63 = vadd.f32 %v227_v55, %v187_v57  ;;  %v311_v1 = vpop.permute.xlu0 %310 }
  0xc8   :  { %v315_v2 = vsel %vm314_vm5, %v311_v1, %v313_v61  ;;  %v316_v4 = vsel %vm314_vm5, %v313_v61, %v311_v1 }
  0xc9   :  { %v248_v6 = vadd.f32 %v703_v9, %v228_v62  ;;  %v249_v7 = vadd.f32 %v245_v51, %v229_v63  ;;  %v330_v14 = vmul.f32 %v467_v53, %v315_v2  ;;  %v331_v16 = vmul.f32 %v327_v0, %v316_v4 }
  0xcb   :  { %v355_v12 = vpop.permute.xlu1 %354  ;;  %v290_v13 = vadd.f32 %v288_v8, %v248_v6  ;;  %v291_v15 = vadd.f32 %v289_v10, %v249_v7  ;;  %v353_v18 = vpop.permute.xlu0 %352 }
  0xcc   :  { %v357_v19 = vsel %vm356_vm6, %v353_v18, %v355_v12  ;;  %v358_v21 = vsel %vm356_vm6, %v355_v12, %v353_v18 }
  0xcd   :  { %v332_v23 = vadd.f32 %v330_v14, %v290_v13  ;;  %v333_v24 = vadd.f32 %v331_v16, %v291_v15  ;;  %v372_v17 = vmul.f32 %v470_v58, %v357_v19  ;;  %v373_v25 = vmul.f32 %v369_v5, %v358_v21 }
  0xcf   :  { %v397_v9 = vpop.permute.xlu1 %396  ;;  %v374_v26 = vadd.f32 %v372_v17, %v332_v23  ;;  %v375_v27 = vadd.f32 %v373_v25, %v333_v24  ;;  %v395_v28 = vpop.permute.xlu0 %394 }
  0xd0   :  { %v399_v29 = vsel %vm398_vm7, %v395_v28, %v397_v9  ;;  %v400_v30 = vsel %vm398_vm7, %v397_v9, %v395_v28 }
  0xd1   :  { %v414_v31 = vmul.f32 %v473_v11, %v399_v29  ;;  %v415_v3 = vmul.f32 %v411_v22, %v400_v30 }
  0xd3   :  { %v416_v32 = vadd.f32 %v414_v31, %v374_v26  ;;  %v417_v33 = vadd.f32 %v415_v3, %v375_v27 }
  0xd5   :  { %v418_v34 = vmax.f32 %v416_v32, 0.0  ;;  %v419_v35 = vmax.f32 %v417_v33, 0.0 }
  0xd7   :  { %v422_v20 = vcombine.low %v418_v34, %v419_v35 }
  0xd9   :  { %474 = vst.sshfl [vmem:[#allocation9] sm:$0x33 pattern:$0x76325410] %v422_v20 }
  0xda   :  { %555 = shalt.err (!%p552_p9)
}
  0xdb   :  { %s556_s20 = scalar_lea.hbm %s740_s3, 64 }
  0xdc   :  { %p557_p10 = scmp.ne.s32.totalorder %s740_s3, %s556_s20  ;;  %p560_p11 = scmp.lt.u32.totalorder %s556_s20, %s740_s3 }
  0xde   :  { %p562_p12 = pnand %p560_p11, %p557_p10 }
  0xe0   :  { %565 = shalt.err (!%p562_p12)
}
  0xe1   :  { %441 = dma.vmem_to_hbm [thread:$0]  %s439_s17, 64, %s740_s3, [#allocation4]  }
  0xe2   :  { %572 = dma.done.wait [#allocation4], 64  }
  0xe3   :  { %573 = vsyncadd [#allocation4], 4294967232 }
  0xe4   :  { %445 = vsyncpa [#allocation3], 1 }
  0xe5   :  { %446 = vsyncpa [#allocation8], 1 }
  0xe6   :  { %447 = vsyncpa [#allocation4], 1 }
  0xe7   :  { %448 = vsyncpa [#allocation5], 1 }

</bundles_post_ra>
